<compile_context>
chip_gen: v7x
topology: tpu7x:2x2x1
jax: 0.10.0
libtpu: 0.0.40
codegen_flags: <defaults>
</compile_context>

<pallas_src>
import functools

import jax
import jax.numpy as jnp
from jax.experimental import pallas as pl
from jax.experimental.pallas import tpu as pltpu


def _round_up(v, m):
    return -(-v // m) * m


def _global_average_kernel(off_ref, len_ref, x_ref, o_ref, acc_ref, *, n, tm):
    t = pl.program_id(0)
    nt = pl.num_programs(0)
    b_pad = acc_ref.shape[0]

    @pl.when(t == 0)
    def _init():
        acc_ref[...] = jnp.zeros_like(acc_ref)

    # Segment-membership weights: W[b, r] = 1.0 iff global row (t*tm + r) lies
    # inside segment b, else 0.0.  Offsets/lengths broadcast along lanes.
    rows = t * tm + jax.lax.broadcasted_iota(jnp.int32, (b_pad, tm), 1)
    offs = off_ref[...]                       # (b_pad, 1) int32
    lens = len_ref[...]                       # (b_pad, 1) int32
    w = ((rows >= offs) & (rows < offs + lens)).astype(jnp.float32)

    xf = x_ref[...].astype(jnp.float32)       # (tm, d), cast once per tile
    if n % tm != 0:
        # Last tile extends past N: zero the padded rows so stray NaN/Inf in
        # the uninitialized VMEM tail cannot leak through 0 * NaN in the matmul.
        local = jax.lax.broadcasted_iota(jnp.int32, (tm, 1), 0)
        xf = jnp.where(t * tm + local < n, xf, 0.0)

    # Bucket the whole row tile into per-segment partial sums on the MXU.
    acc_ref[...] += jnp.dot(w, xf, preferred_element_type=jnp.float32)

    @pl.when(t == nt - 1)
    def _finalize():
        # maximum() guards padded (and hypothetical empty) segments: their
        # accumulator rows are 0 and get written as 0 instead of NaN.
        lens_f = jnp.maximum(lens, 1).astype(jnp.float32)
        o_ref[...] = (acc_ref[...] / lens_f).astype(o_ref.dtype)


def global_average_pallas(x, batch_lengths, *, tm=None):
    """
    :param x: [N, D] float features
    :param batch_lengths: [B] integer lengths (sum == N, all > 0)
    :return: [B, D] averaged features
    """
    n, d = x.shape
    b = int(batch_lengths.shape[0])
    b_pad = _round_up(max(b, 8), 8)

    if tm is None:
        # ~2 MiB per x tile (double-buffered by the pipeline) -> ample VMEM
        # headroom on all of v5e/v6e/v7x; clamp to the (padded) row count.
        tm = max(8, min(1024, (2 * 1024 * 1024) // max(1, 4 * d)))
    tm = max(8, (tm // 8) * 8)
    tm = min(tm, _round_up(n, 8))

    lengths = batch_lengths.astype(jnp.int32)
    offsets = jnp.concatenate(
        [jnp.zeros((1,), jnp.int32), jnp.cumsum(lengths)[:-1]]
    ).astype(jnp.int32)

    # Column-layout (b_pad, 1) scalars; padded segments get off=N, len=0 so
    # they never match any row and their accumulator rows stay 0.
    off_col = jnp.full((b_pad, 1), n, dtype=jnp.int32).at[:b, 0].set(offsets)
    len_col = jnp.zeros((b_pad, 1), dtype=jnp.int32).at[:b, 0].set(lengths)

    grid = (pl.cdiv(n, tm),)
    kernel = functools.partial(_global_average_kernel, n=n, tm=tm)

    out_padded = pl.pallas_call(
        kernel,
        out_shape=jax.ShapeDtypeStruct((b_pad, d), x.dtype),
        grid_spec=pltpu.PrefetchScalarGridSpec(
            num_scalar_prefetch=0,
            grid=grid,
            in_specs=[
                pl.BlockSpec((b_pad, 1), lambda t: (0, 0)),   # segment offsets
                pl.BlockSpec((b_pad, 1), lambda t: (0, 0)),   # segment lengths
                pl.BlockSpec((tm, d), lambda t: (t, 0)),      # x row tiles
            ],
            out_specs=pl.BlockSpec((b_pad, d), lambda t: (0, 0)),
            scratch_shapes=[pltpu.VMEM((b_pad, d), jnp.float32)],
        ),
        compiler_params=pltpu.CompilerParams(
            # The single grid axis is the row reduction (carries the
            # accumulator), so it must stay "arbitrary".
            dimension_semantics=("arbitrary",),
        ),
    )(off_col, len_col, x)

    return out_padded[:b]


class GlobalAverageBlock:
    """JAX/Pallas equivalent of the PyTorch GlobalAverageBlock (no params)."""

    def __call__(self, x, batch):
        return global_average_pallas(x, batch["stack_lengths"][-1])


if __name__ == "__main__":
    key = jax.random.PRNGKey(0)
    k1, k2 = jax.random.split(key)

    def ref_global_average(x, lengths):
        outs = []
        i0 = 0
        for length in list(lengths):
            length = int(length)
            outs.append(jnp.mean(x[i0:i0 + length], axis=0))
            i0 += length
        return jnp.stack(outs)

    # Case 1: demo shapes (B=3 clouds, D=32 features, N=16 points), single tile.
    D1 = 32
    lengths1 = jnp.array([5, 8, 3], dtype=jnp.int32)
    N1 = int(lengths1.sum())
    x1 = jax.random.normal(k1, (N1, D1), dtype=jnp.float32)

    block = GlobalAverageBlock()
    out1 = jax.block_until_ready(block(x1, {"stack_lengths": [lengths1]}))
    ref1 = ref_global_average(x1, lengths1)
    assert out1.shape == (3, D1), out1.shape
    assert out1.dtype == x1.dtype
    assert jnp.allclose(out1, ref1, atol=1e-5, rtol=1e-5), (
        float(jnp.max(jnp.abs(out1 - ref1)))
    )

    # Case 2: multiple row tiles + ragged tail (exercises accumulator carry
    # across grid steps and the padded-tail masking).
    D2 = 64
    lengths2 = jnp.array([7, 11, 5, 10], dtype=jnp.int32)
    N2 = int(lengths2.sum())  # 33 -> 5 tiles of 8 rows, last one partial
    x2 = jax.random.normal(k2, (N2, D2), dtype=jnp.float32)
    out2 = jax.block_until_ready(global_average_pallas(x2, lengths2, tm=8))
    ref2 = ref_global_average(x2, lengths2)
    assert out2.shape == (4, D2), out2.shape
    assert out2.dtype == x2.dtype
    assert jnp.allclose(out2, ref2, atol=1e-5, rtol=1e-5), (
        float(jnp.max(jnp.abs(out2 - ref2)))
    )

    print("KERNEL_OK")
</pallas_src>

<mosaic_0001>
module attributes {stable_mosaic.version = 11 : i64} {
  func.func @_global_average_kernel(%arg0: i32, %arg1: memref<8x1xi32, #tpu.memory_space<vmem>>, %arg2: memref<8x1xi32, #tpu.memory_space<vmem>>, %arg3: memref<16x32xf32, #tpu.memory_space<vmem>>, %arg4: memref<8x32xf32, #tpu.memory_space<vmem>>, %arg5: memref<8x32xf32, #tpu.memory_space<vmem>>) attributes {dimension_semantics = [#tpu.dimension_semantics<arbitrary>], iteration_bounds = array<i64: 1>, scalar_prefetch = 0 : i64, scratch_operands = 1 : i64, tpu.core_type = #tpu.core_type<tc>, window_params = [{pipeline_mode = #tpu.pipeline_mode<synchronous>, transform_indices = @transform_0, window_bounds = array<i64: 8, 1>}, {pipeline_mode = #tpu.pipeline_mode<synchronous>, transform_indices = @transform_1, window_bounds = array<i64: 8, 1>}, {transform_indices = @transform_2, window_bounds = array<i64: 16, 32>}, {pipeline_mode = #tpu.pipeline_mode<synchronous>, transform_indices = @transform_3, window_bounds = array<i64: 8, 32>}]} {
    %c0_i32 = arith.constant 0 : i32
    %0 = arith.cmpi eq, %arg0, %c0_i32 : i32
    %1 = arith.extui %0 : i1 to i32
    %c0_i32_0 = arith.constant 0 : i32
    %2 = arith.cmpi ne, %1, %c0_i32_0 : i32
    scf.if %2 {
      %cst_12 = arith.constant 0.000000e+00 : f32
      %25 = vector.broadcast %cst_12 : f32 to vector<8x32xf32>
      %c0_13 = arith.constant 0 : index
      %c0_14 = arith.constant 0 : index
      %26 = vector.load %arg5[%c0_13, %c0_14] : memref<8x32xf32, #tpu.memory_space<vmem>>, vector<8x32xf32>
      tpu.vector_store %arg5[%c0_13, %c0_14], %25 {strides = array<i32>} : memref<8x32xf32, #tpu.memory_space<vmem>>, vector<8x32xf32>,
    } else {
    }
    %c16_i32 = arith.constant 16 : i32
    %3 = arith.muli %arg0, %c16_i32 : i32
    %4 = tpu.iota {dimensions = array<i32: 1>} : vector<8x16xi32>
    %5 = vector.broadcast %3 : i32 to vector<8x16xi32>
    %6 = arith.addi %5, %4 : vector<8x16xi32>
    %c0 = arith.constant 0 : index
    %c0_1 = arith.constant 0 : index
    %7 = vector.load %arg1[%c0, %c0_1] : memref<8x1xi32, #tpu.memory_space<vmem>>, vector<8x1xi32>
    %c0_2 = arith.constant 0 : index
    %c0_3 = arith.constant 0 : index
    %8 = vector.load %arg2[%c0_2, %c0_3] : memref<8x1xi32, #tpu.memory_space<vmem>>, vector<8x1xi32>
    %9 = vector.broadcast %7 : vector<8x1xi32> to vector<8x16xi32>
    %10 = arith.cmpi sge, %6, %9 : vector<8x16xi32>
    %11 = arith.addi %7, %8 : vector<8x1xi32>
    %12 = vector.broadcast %11 : vector<8x1xi32> to vector<8x16xi32>
    %13 = arith.cmpi slt, %6, %12 : vector<8x16xi32>
    %14 = arith.andi %10, %13 : vector<8x16xi1>
    %15 = arith.extui %14 : vector<8x16xi1> to vector<8x16xi32>
    %16 = arith.sitofp %15 : vector<8x16xi32> to vector<8x16xf32>
    %c0_4 = arith.constant 0 : index
    %c0_5 = arith.constant 0 : index
    %17 = vector.load %arg3[%c0_4, %c0_5] : memref<16x32xf32, #tpu.memory_space<vmem>>, vector<16x32xf32>
    %c0_6 = arith.constant 0 : index
    %c0_7 = arith.constant 0 : index
    %18 = vector.load %arg5[%c0_6, %c0_7] : memref<8x32xf32, #tpu.memory_space<vmem>>, vector<8x32xf32>
    %cst = arith.constant dense<0.000000e+00> : vector<8x32xf32>
    %19 = tpu.matmul %16, %17, %cst {dimension_numbers = #tpu.dot_dimension_numbers<[1], [0], [0], [1], [0, 0, 1, 1], [], []>} : vector<8x16xf32>, vector<16x32xf32>, vector<8x32xf32> -> vector<8x32xf32>
    %20 = arith.addf %18, %19 : vector<8x32xf32>
    %c0_8 = arith.constant 0 : index
    %c0_9 = arith.constant 0 : index
    %21 = vector.load %arg5[%c0_8, %c0_9] : memref<8x32xf32, #tpu.memory_space<vmem>>, vector<8x32xf32>
    tpu.vector_store %arg5[%c0_8, %c0_9], %20 {strides = array<i32>} : memref<8x32xf32, #tpu.memory_space<vmem>>, vector<8x32xf32>,
    %c0_i32_10 = arith.constant 0 : i32
    %22 = arith.cmpi eq, %arg0, %c0_i32_10 : i32
    %23 = arith.extui %22 : i1 to i32
    %c0_i32_11 = arith.constant 0 : i32
    %24 = arith.cmpi ne, %23, %c0_i32_11 : i32
    scf.if %24 {
      %c1_i32 = arith.constant 1 : i32
      %25 = vector.broadcast %c1_i32 : i32 to vector<8x1xi32>
      %26 = arith.maxsi %8, %25 : vector<8x1xi32>
      %27 = arith.sitofp %26 : vector<8x1xi32> to vector<8x1xf32>
      %c0_12 = arith.constant 0 : index
      %c0_13 = arith.constant 0 : index
      %28 = vector.load %arg5[%c0_12, %c0_13] : memref<8x32xf32, #tpu.memory_space<vmem>>, vector<8x32xf32>
      %29 = vector.broadcast %27 : vector<8x1xf32> to vector<8x32xf32>
      %30 = arith.divf %28, %29 : vector<8x32xf32>
      %c0_14 = arith.constant 0 : index
      %c0_15 = arith.constant 0 : index
      %31 = vector.load %arg4[%c0_14, %c0_15] : memref<8x32xf32, #tpu.memory_space<vmem>>, vector<8x32xf32>
      tpu.vector_store %arg4[%c0_14, %c0_15], %30 {strides = array<i32>} : memref<8x32xf32, #tpu.memory_space<vmem>>, vector<8x32xf32>,
    } else {
    }
    return
  }
  func.func @transform_0(%arg0: i32) -> (i32, i32) {
    %c0_i32 = arith.constant 0 : i32
    %c0_i32_0 = arith.constant 0 : i32
    %c0_i32_1 = arith.constant 0 : i32
    return %c0_i32, %c0_i32_0 : i32, i32
  }
  func.func @transform_1(%arg0: i32) -> (i32, i32) {
    %c0_i32 = arith.constant 0 : i32
    %c0_i32_0 = arith.constant 0 : i32
    %c0_i32_1 = arith.constant 0 : i32
    return %c0_i32, %c0_i32_0 : i32, i32
  }
  func.func @transform_2(%arg0: i32) -> (i32, i32) {
    %c0_i32 = arith.constant 0 : i32
    %c0_i32_0 = arith.constant 0 : i32
    return %arg0, %c0_i32 : i32, i32
  }
  func.func @transform_3(%arg0: i32) -> (i32, i32) {
    %c0_i32 = arith.constant 0 : i32
    %c0_i32_0 = arith.constant 0 : i32
    %c0_i32_1 = arith.constant 0 : i32
    return %c0_i32, %c0_i32_0 : i32, i32
  }
}

</mosaic_0001>

<bundles_post_ra>
// kernel: tpu_custom_call.1
= control target key start
LH: loop header
LB: loop body
LE: loop exit
PB: predicated region body
PF: predicated region fallthrough
CT: control target
= control target key end

     0   :  { %s249_s0 = inlined_call_operand.vmem [shape: s32[8,1], index: 0, kind: input, shape index: {}]   ;;  %s250_s1 = inlined_call_operand.vmem [shape: s32[8,1], index: 1, kind: input, shape index: {}]   ;;  %s251_s2 = inlined_call_operand.vmem [shape: f32[16,32], index: 2, kind: input, shape index: {}]   ;;  %s252_s3 = inlined_call_operand.hbm [shape: f32[8,32], index: 3, kind: output, shape index: {}]  }
   0x1   :  { %v26_v0 = vld [vmem:[%s249_s0] sm:$0xff] }
   0x2   :  { %v27_v1 = vld [vmem:[%s250_s1] sm:$0xff] }
   0x3   :  { %8 = vsyncpa [#allocation4], 0  ;;  %v197_v2 = vmov 0   ;;  %v32_v3 = vadd.s32 %v27_v1, %v26_v0  ;;  %v198_v4 = vmov 0.0|0.0   ;;  %v40_v5 = vld [vmem:[%s251_s2] sm:$0xff]  ;;  %v41_v6 = vld [vmem:[%s251_s2 + $0x8] sm:$0xff]  ;;  %v22_v11 = vlaneseq }
   0x4   :  { %169 = vset.pattern.permute.xlu0 %v197_v2  ;;  %170 = vset.pattern.permute.xlu1 %v197_v2  ;;  %v162_v7 = vpack.c.bf16 %v41_v6, %v40_v5  ;;  %vm19_vm0 = vcmask 261120   ;;  %v199_v8 = vmov 0.0   ;;  %vm200_vm1 = vmmov 0   ;;  %s201_s0 = smov [#allocation3]  }
   0x5   :  { %29 = vperm.xlu0 %169, %v26_v0   ;;  %161 = vmatprep.subr.bf16.mxu0 %v198_v4  ;;  %20 = vst.msk [vmem:[#allocation2] sm:$0xff] %vm19_vm0, %v199_v8  ;;  %vm123_vm2 = vcmp.gt.s32.totalorder %v27_v1, 1  ;;  %v23_v13 = vand.u32 127, %v22_v11  ;;  %vm43_vm5 = vcmask 130048   ;;  %s141_s1 = sshll.u32 %s201_s0, 4  ;;  %s142_s1 = int_to_ptr.vmem [resolvable:$true] %s141_s1 }
   0x6   :  { %163 = vmatpush3.bf16.msra.mxu0 %v162_v7  ;;  %158 = vmatprep.mubr.msk.f32.mxu0 %vm200_vm1, %v199_v8  ;;  %v124_v9 = vsel %vm123_vm2, %v27_v1, 1  ;;  %s173_s2 = scalar_lea.vmem %s142_s1, 128  ;;  %p178_p1 = scmp.lt.s32.totalorder %s142_s1, %s142_s1 }
   0x7   :  { %v125_v10 = vcvt.s32.f32 %v124_v9  ;;  %p174_p0 = scmp.ne.s32.totalorder %s142_s1, %s173_s2  ;;  %p179_p2 = scmp.lt.s32.totalorder %s173_s2, %s173_s2 }
   0x9   :  { %34 = vperm.xlu0 %169, %v32_v3   ;;  %129 = vperm.xlu1 %170, %v125_v10   ;;  %p180_p3 = por %p179_p2, %p178_p1 }
   0xb   :  { %p181_p4 = pnand %p180_p3, %p174_p0 }
   0xc   :  { %v42_v17 = vld [vmem:[#allocation2] sm:$0xff] }
  0x84   :  { %v30_v12 = vpop.permute.xlu0 %29 }
  0x85   :  { %vm31_vm3 = vcmp.ge.s32.totalorder %v23_v13, %v30_v12 }
  0x88   :  { %v35_v14 = vpop.permute.xlu0 %34  ;;  %v130_v16 = vpop.permute.xlu1 %129 }
  0x89   :  { %vm36_vm4 = vcmp.lt.s32.totalorder %v23_v13, %v35_v14  ;;  %171 = vrcp.f32 %v130_v16 }
  0x8a   :  { %vm37_vm6 = vmand %vm31_vm3, %vm36_vm4 }
  0x8b   :  { %v149_v15 = vsel %vm37_vm6, 1.0, %v199_v8 }
  0x8c   :  { %159 = vmatmul.mubr.msk.f32.vlgmr.msra.gmra.mrb[0].mxu0 %vm43_vm5, %v149_v15 }
  0x93   :  { %v172_v21 = vpop.eup %171 }
 0x15f   :  { %v113_v18 = vpop.f32.mrb[0].mxu0 }
 0x160   :  { %v117_v19 = vadd.f32 %v113_v18, %v42_v17  ;;  %v160_v20 = vpop.f32.mrb[1].mxu0 }
 0x162   :  { %119 = vst.msk [vmem:[#allocation2] sm:$0xff] %vm19_vm0, %v117_v19 }
 0x169   :  { %v126_v22 = vld [vmem:[#allocation2] sm:$0xff] }
 0x16a   :  { %v133_v23 = vmul.f32 %v172_v21, %v126_v22 }
 0x16c   :  { %134 = vst.msk [vmem:[#allocation3] sm:$0xff] %vm19_vm0, %v133_v23 }
 0x16d   :  { %184 = shalt.err (!%p181_p4)
}
 0x16e   :  { %s185_s22 = scalar_lea.hbm %s252_s3, 128 }
 0x16f   :  { %p186_p5 = scmp.ne.s32.totalorder %s252_s3, %s185_s22  ;;  %p189_p6 = scmp.lt.u32.totalorder %s185_s22, %s252_s3 }
 0x171   :  { %p191_p7 = pnand %p189_p6, %p186_p5 }
 0x173   :  { %194 = shalt.err (!%p191_p7)
}
 0x174   :  { %144 = dma.vmem_to_hbm [thread:$0]  %s142_s1, 128, %s252_s3, [#allocation4]  }
 0x175   :  { %195 = dma.done.wait [#allocation4], 128  }
 0x176   :  { %196 = vsyncadd [#allocation4], 4294967168 }
 0x177   :  { %148 = vsyncpa [#allocation4], 1 }

</bundles_post_ra>
